<compile_context>
chip_gen: v5e
topology: v5e:2x2
jax: 0.10.0
libtpu: 0.0.40
codegen_flags: <defaults>
</compile_context>

<pallas_src>
import math

import jax
import jax.numpy as jnp
from jax.experimental import pallas as pl
from jax.experimental.pallas import tpu as pltpu

_VMEM_BUDGET = 24 * 1024 * 1024    # target double-buffered block footprint (fits every gen)
_VMEM_LIMIT = 40 * 1024 * 1024     # raised scoped-VMEM limit (<= v7x 64 MiB physical)
_KRON_BYTES_MAX = 4 * 1024 * 1024  # max size of the fused H/W Kronecker weight
_MAX_UNROLL = 8                    # static per-block batch unroll cap


def _linear_interp_matrix(in_size, out_size):
    """[out_size, in_size] align_corners=True 1-D linear interpolation weights (f32)."""
    if out_size == 1:
        coords = jnp.zeros((1,), jnp.float32)
    else:
        scale = (in_size - 1) / (out_size - 1)
        coords = jnp.arange(out_size, dtype=jnp.float32) * jnp.float32(scale)
    i0 = jnp.clip(jnp.floor(coords).astype(jnp.int32), 0, max(in_size - 2, 0))
    i1 = jnp.minimum(i0 + 1, in_size - 1)
    f = coords - i0.astype(jnp.float32)
    cols = jnp.arange(in_size, dtype=jnp.int32)
    w = ((cols[None, :] == i0[:, None]).astype(jnp.float32) * (1.0 - f)[:, None]
         + (cols[None, :] == i1[:, None]).astype(jnp.float32) * f[:, None])
    return w  # f32 [out_size, in_size]


# ----------------------------- fused single-pass kernel -----------------------------

def _fused_resize_kernel(x_ref, whw_t_ref, wd_ref, o_ref):
    """x: (Bnc, Di, Hi*Wi); whw_t: (Hi*Wi, Ho*Wo); wd: (Do, Di); o: (Bnc, Do, Ho*Wo)."""
    bnc, di, hwi = x_ref.shape
    hwo = whw_t_ref.shape[1]
    # H/W interpolation: one big-M 2-D MXU matmul, lane dim = Ho*Wo (no broadcasts).
    x2 = x_ref[...].reshape(bnc * di, hwi)
    y = jnp.dot(x2, whw_t_ref[...], preferred_element_type=jnp.float32)
    y = y.reshape(bnc, di, hwo)
    # D interpolation (+ folded `factor`): small 2-D matmuls, lane dim stays Ho*Wo.
    wd = wd_ref[...]
    for b in range(bnc):  # static unroll, bnc <= _MAX_UNROLL
        o_ref[b] = jnp.dot(wd, y[b], preferred_element_type=jnp.float32).astype(o_ref.dtype)


# ------------------------ fallback kernels (large volumes) --------------------------

def _hw_resize_kernel(x_ref, wh_ref, ww_t_ref, o_ref):
    """x: (Rb, Hi, Wi); wh: (Ho, Hi); ww_t: (Wi, Wo); o: (Rb, Ho, Wo)."""
    rb = x_ref.shape[0]
    wh = wh_ref[...]
    ww_t = ww_t_ref[...]
    for r in range(rb):  # static unroll; plain 2-D MXU matmuls, no weight broadcasts
        t = jnp.dot(wh, x_ref[r], preferred_element_type=jnp.float32)        # (Ho, Wi)
        o_ref[r] = jnp.dot(t, ww_t, preferred_element_type=jnp.float32).astype(o_ref.dtype)


def _d_resize_kernel(y_ref, wd_ref, o_ref):
    """y: (Bnc, Di, Mb); wd: (Do, Di); o: (Bnc, Do, Mb)."""
    bnc = y_ref.shape[0]
    wd = wd_ref[...]
    for b in range(bnc):  # static unroll
        o_ref[b] = jnp.dot(wd, y_ref[b], preferred_element_type=jnp.float32).astype(o_ref.dtype)


# ------------------------------------ wrapper ---------------------------------------

def resize_transformer_block(x, factor, mode="trilinear"):
    """Pallas TPU forward of ResizeTransformer_block for 5-D NCDHW input."""
    assert mode == "trilinear", "only the module's default trilinear path is implemented"
    assert x.ndim == 5, "trilinear mode expects 5-D NCDHW input"
    if factor == 1:
        return x

    N, C, Di, Hi, Wi = x.shape
    # NOTE: PyTorch computes output sizes as floor(in_size * scale_factor); exotic
    # float factors could round differently by one — matches for common factors.
    Do = int(math.floor(Di * factor))
    Ho = int(math.floor(Hi * factor))
    Wo = int(math.floor(Wi * factor))

    w_dtype = jnp.bfloat16 if x.dtype == jnp.bfloat16 else jnp.float32
    wh = _linear_interp_matrix(Hi, Ho).astype(w_dtype)
    ww = _linear_interp_matrix(Wi, Wo).astype(w_dtype)
    # `factor * x` (before or after interpolate) commutes with the linear resize:
    # fold the scalar into the D-axis weights — zero extra cost.
    wd = (_linear_interp_matrix(Di, Do) * jnp.float32(factor)).astype(w_dtype)

    NC = N * C
    HWi, HWo = Hi * Wi, Ho * Wo

    # ------------- primary path: fully fused, Kronecker H/W weight -------------
    kron_bytes = 4 * HWi * HWo
    per_slice = 2 * (4 * Di * HWi) + 2 * (4 * Do * HWo) + 4 * Di * HWo  # 2x-buffered io + mid
    fixed = 2 * (kron_bytes + 4 * Do * Di)
    if kron_bytes <= _KRON_BYTES_MAX and fixed + per_slice <= _VMEM_BUDGET:
        whw_t = jnp.kron(wh.astype(jnp.float32), ww.astype(jnp.float32)).T.astype(w_dtype)
        x3 = x.reshape(NC, Di, HWi)
        Bnc = int(max(1, min(NC, _MAX_UNROLL, (_VMEM_BUDGET - fixed) // per_slice)))
        out = pl.pallas_call(
            _fused_resize_kernel,
            out_shape=jax.ShapeDtypeStruct((NC, Do, HWo), x.dtype),
            grid=(pl.cdiv(NC, Bnc),),
            in_specs=[
                pl.BlockSpec((Bnc, Di, HWi), lambda i: (i, 0, 0)),
                pl.BlockSpec((HWi, HWo), lambda i: (0, 0)),
                pl.BlockSpec((Do, Di), lambda i: (0, 0)),
            ],
            out_specs=pl.BlockSpec((Bnc, Do, HWo), lambda i: (i, 0, 0)),
            compiler_params=pltpu.CompilerParams(
                dimension_semantics=("parallel",),
                vmem_limit_bytes=_VMEM_LIMIT),
        )(x3, whw_t, wd)
        return out.reshape(N, C, Do, Ho, Wo)

    # ------------- fallback: two passes for large volumes -------------
    # Pass 1: H and W interpolation per (n,c,d) slice; intermediate stored in bf16
    # to halve the dominant HBM write+read.
    inter_dtype = jnp.bfloat16
    ww_t = ww.T                                     # (Wi, Wo)
    R = NC * Di
    x1 = x.reshape(R, Hi, Wi)
    p1_slice = 2 * (4 * Hi * Wi + 2 * Ho * Wo) + 4 * Ho * Wi
    Rb = int(max(1, min(R, _MAX_UNROLL, _VMEM_BUDGET // max(p1_slice, 1))))
    y1 = pl.pallas_call(
        _hw_resize_kernel,
        out_shape=jax.ShapeDtypeStruct((R, Ho, Wo), inter_dtype),
        grid=(pl.cdiv(R, Rb),),
        in_specs=[
            pl.BlockSpec((Rb, Hi, Wi), lambda r: (r, 0, 0)),
            pl.BlockSpec((Ho, Hi), lambda r: (0, 0)),
            pl.BlockSpec((Wi, Wo), lambda r: (0, 0)),
        ],
        out_specs=pl.BlockSpec((Rb, Ho, Wo), lambda r: (r, 0, 0)),
        compiler_params=pltpu.CompilerParams(
            dimension_semantics=("parallel",),
            vmem_limit_bytes=_VMEM_LIMIT),
    )(x1, wh, ww_t)

    # Pass 2: D interpolation (+ factor) over 128-aligned lane tiles of Ho*Wo.
    M = HWo
    y2 = y1.reshape(NC, Di, M)
    Mb = M if M <= 4096 else 4096                   # 4096 % 128 == 0; last tile may be ragged
    wd2 = wd.astype(inter_dtype)                    # keep the MXU operands bf16-native
    p2_slice = 2 * Mb * (2 * Di + 4 * Do)
    Bnc = int(max(1, min(NC, _MAX_UNROLL, _VMEM_BUDGET // max(p2_slice, 1))))
    out = pl.pallas_call(
        _d_resize_kernel,
        out_shape=jax.ShapeDtypeStruct((NC, Do, M), x.dtype),
        grid=(pl.cdiv(NC, Bnc), pl.cdiv(M, Mb)),
        in_specs=[
            pl.BlockSpec((Bnc, Di, Mb), lambda b, m: (b, 0, m)),
            pl.BlockSpec((Do, Di), lambda b, m: (0, 0)),
        ],
        out_specs=pl.BlockSpec((Bnc, Do, Mb), lambda b, m: (b, 0, m)),
        compiler_params=pltpu.CompilerParams(
            dimension_semantics=("parallel", "parallel"),
            vmem_limit_bytes=_VMEM_LIMIT),
    )(y2, wd2)
    return out.reshape(N, C, Do, Ho, Wo)


# ------------------------------- pure-JAX reference ---------------------------------

def resize_transformer_ref(x, factor, mode="trilinear"):
    """Reference: trilinear align_corners=True interpolate + factor scaling."""
    if factor == 1:
        return x
    N, C, Di, Hi, Wi = x.shape
    Do = int(math.floor(Di * factor))
    Ho = int(math.floor(Hi * factor))
    Wo = int(math.floor(Wi * factor))

    def axis_coords(out_size, in_size):
        if out_size == 1:
            return jnp.zeros((1,), jnp.float32)
        return jnp.arange(out_size, dtype=jnp.float32) * ((in_size - 1) / (out_size - 1))

    zc, yc, xc = axis_coords(Do, Di), axis_coords(Ho, Hi), axis_coords(Wo, Wi)
    z0 = jnp.clip(jnp.floor(zc).astype(jnp.int32), 0, max(Di - 2, 0)); fz = zc - z0
    y0 = jnp.clip(jnp.floor(yc).astype(jnp.int32), 0, max(Hi - 2, 0)); fy = yc - y0
    x0 = jnp.clip(jnp.floor(xc).astype(jnp.int32), 0, max(Wi - 2, 0)); fx = xc - x0
    z1 = jnp.minimum(z0 + 1, Di - 1)
    y1 = jnp.minimum(y0 + 1, Hi - 1)
    x1 = jnp.minimum(x0 + 1, Wi - 1)

    xf = x.astype(jnp.float32)
    out = jnp.zeros((N, C, Do, Ho, Wo), jnp.float32)
    for zi, wz in ((z0, 1.0 - fz), (z1, fz)):
        for yi, wy in ((y0, 1.0 - fy), (y1, fy)):
            for xi, wx in ((x0, 1.0 - fx), (x1, fx)):
                v = xf[:, :, zi][:, :, :, yi][:, :, :, :, xi]
                w = wz[:, None, None] * wy[None, :, None] * wx[None, None, :]
                out = out + v * w
    return (factor * out).astype(x.dtype)


if __name__ == "__main__":
    key = jax.random.PRNGKey(0)
    N, C, D, H, W = 2, 3, 8, 8, 8
    x = jax.random.normal(key, (N, C, D, H, W), jnp.float32)

    # Exercise both module branches: upsample (factor>1) and downsample (factor<1).
    for factor in (2, 0.5):
        out = jax.block_until_ready(resize_transformer_block(x, factor))
        ref = resize_transformer_ref(x, factor)
        assert out.shape == ref.shape, (out.shape, ref.shape)
        # default-precision MXU passes (bf16) on f32 inputs -> small mixed abs/rel error
        assert bool(jnp.allclose(out, ref, rtol=3e-2, atol=3e-2)), (
            f"factor={factor}: max abs err {float(jnp.max(jnp.abs(out - ref)))}")

    # identity branch
    assert resize_transformer_block(x, 1) is x

    print("KERNEL_OK")
</pallas_src>

<mosaic_0001>
module attributes {stable_mosaic.version = 11 : i64} {
  func.func @_fused_resize_kernel(%arg0: i32, %arg1: memref<6x8x64xf32, #tpu.memory_space<vmem>>, %arg2: memref<64x256xf32, #tpu.memory_space<vmem>>, %arg3: memref<16x8xf32, #tpu.memory_space<vmem>>, %arg4: memref<6x16x256xf32, #tpu.memory_space<vmem>>) attributes {dimension_semantics = [#tpu.dimension_semantics<parallel>], iteration_bounds = array<i64: 1>, scalar_prefetch = 0 : i64, scratch_operands = 0 : i64, tpu.core_type = #tpu.core_type<tc>, window_params = [{transform_indices = @transform_0, window_bounds = array<i64: 6, 8, 64>}, {pipeline_mode = #tpu.pipeline_mode<synchronous>, transform_indices = @transform_1, window_bounds = array<i64: 64, 256>}, {pipeline_mode = #tpu.pipeline_mode<synchronous>, transform_indices = @transform_2, window_bounds = array<i64: 16, 8>}, {transform_indices = @transform_3, window_bounds = array<i64: 6, 16, 256>}]} {
    %c0 = arith.constant 0 : index
    %c0_0 = arith.constant 0 : index
    %c0_1 = arith.constant 0 : index
    %0 = vector.load %arg1[%c0, %c0_0, %c0_1] : memref<6x8x64xf32, #tpu.memory_space<vmem>>, vector<6x8x64xf32>
    %1 = vector.shape_cast %0 : vector<6x8x64xf32> to vector<48x64xf32>
    %c0_2 = arith.constant 0 : index
    %c0_3 = arith.constant 0 : index
    %2 = vector.load %arg2[%c0_2, %c0_3] : memref<64x256xf32, #tpu.memory_space<vmem>>, vector<64x256xf32>
    %cst = arith.constant dense<0.000000e+00> : vector<48x256xf32>
    %3 = tpu.matmul %1, %2, %cst {dimension_numbers = #tpu.dot_dimension_numbers<[1], [0], [0], [1], [0, 0, 1, 1], [], []>} : vector<48x64xf32>, vector<64x256xf32>, vector<48x256xf32> -> vector<48x256xf32>
    %4 = vector.shape_cast %3 : vector<48x256xf32> to vector<6x8x256xf32>
    %c0_4 = arith.constant 0 : index
    %c0_5 = arith.constant 0 : index
    %5 = vector.load %arg3[%c0_4, %c0_5] : memref<16x8xf32, #tpu.memory_space<vmem>>, vector<16x8xf32>
    %6 = vector.extract_strided_slice %4 {offsets = [0, 0, 0], sizes = [1, 8, 256], strides = [1, 1, 1]} : vector<6x8x256xf32> to vector<1x8x256xf32>
    %7 = vector.shape_cast %6 : vector<1x8x256xf32> to vector<8x256xf32>
    %cst_6 = arith.constant dense<0.000000e+00> : vector<16x256xf32>
    %8 = tpu.matmul %5, %7, %cst_6 {dimension_numbers = #tpu.dot_dimension_numbers<[1], [0], [0], [1], [0, 0, 1, 1], [], []>} : vector<16x8xf32>, vector<8x256xf32>, vector<16x256xf32> -> vector<16x256xf32>
    %c0_7 = arith.constant 0 : index
    %c0_8 = arith.constant 0 : index
    %c0_9 = arith.constant 0 : index
    %9 = vector.load %arg4[%c0_7, %c0_8, %c0_9] : memref<6x16x256xf32, #tpu.memory_space<vmem>>, vector<1x16x256xf32>
    %10 = vector.shape_cast %9 : vector<1x16x256xf32> to vector<16x256xf32>
    %11 = vector.shape_cast %8 : vector<16x256xf32> to vector<1x16x256xf32>
    tpu.vector_store %arg4[%c0_7, %c0_8, %c0_9], %11 {strides = array<i32>} : memref<6x16x256xf32, #tpu.memory_space<vmem>>, vector<1x16x256xf32>,
    %12 = vector.extract_strided_slice %4 {offsets = [1, 0, 0], sizes = [1, 8, 256], strides = [1, 1, 1]} : vector<6x8x256xf32> to vector<1x8x256xf32>
    %13 = vector.shape_cast %12 : vector<1x8x256xf32> to vector<8x256xf32>
    %cst_10 = arith.constant dense<0.000000e+00> : vector<16x256xf32>
    %14 = tpu.matmul %5, %13, %cst_10 {dimension_numbers = #tpu.dot_dimension_numbers<[1], [0], [0], [1], [0, 0, 1, 1], [], []>} : vector<16x8xf32>, vector<8x256xf32>, vector<16x256xf32> -> vector<16x256xf32>
    %c1 = arith.constant 1 : index
    %c0_11 = arith.constant 0 : index
    %c0_12 = arith.constant 0 : index
    %15 = vector.load %arg4[%c1, %c0_11, %c0_12] : memref<6x16x256xf32, #tpu.memory_space<vmem>>, vector<1x16x256xf32>
    %16 = vector.shape_cast %15 : vector<1x16x256xf32> to vector<16x256xf32>
    %17 = vector.shape_cast %14 : vector<16x256xf32> to vector<1x16x256xf32>
    tpu.vector_store %arg4[%c1, %c0_11, %c0_12], %17 {strides = array<i32>} : memref<6x16x256xf32, #tpu.memory_space<vmem>>, vector<1x16x256xf32>,
    %18 = vector.extract_strided_slice %4 {offsets = [2, 0, 0], sizes = [1, 8, 256], strides = [1, 1, 1]} : vector<6x8x256xf32> to vector<1x8x256xf32>
    %19 = vector.shape_cast %18 : vector<1x8x256xf32> to vector<8x256xf32>
    %cst_13 = arith.constant dense<0.000000e+00> : vector<16x256xf32>
    %20 = tpu.matmul %5, %19, %cst_13 {dimension_numbers = #tpu.dot_dimension_numbers<[1], [0], [0], [1], [0, 0, 1, 1], [], []>} : vector<16x8xf32>, vector<8x256xf32>, vector<16x256xf32> -> vector<16x256xf32>
    %c2 = arith.constant 2 : index
    %c0_14 = arith.constant 0 : index
    %c0_15 = arith.constant 0 : index
    %21 = vector.load %arg4[%c2, %c0_14, %c0_15] : memref<6x16x256xf32, #tpu.memory_space<vmem>>, vector<1x16x256xf32>
    %22 = vector.shape_cast %21 : vector<1x16x256xf32> to vector<16x256xf32>
    %23 = vector.shape_cast %20 : vector<16x256xf32> to vector<1x16x256xf32>
    tpu.vector_store %arg4[%c2, %c0_14, %c0_15], %23 {strides = array<i32>} : memref<6x16x256xf32, #tpu.memory_space<vmem>>, vector<1x16x256xf32>,
    %24 = vector.extract_strided_slice %4 {offsets = [3, 0, 0], sizes = [1, 8, 256], strides = [1, 1, 1]} : vector<6x8x256xf32> to vector<1x8x256xf32>
    %25 = vector.shape_cast %24 : vector<1x8x256xf32> to vector<8x256xf32>
    %cst_16 = arith.constant dense<0.000000e+00> : vector<16x256xf32>
    %26 = tpu.matmul %5, %25, %cst_16 {dimension_numbers = #tpu.dot_dimension_numbers<[1], [0], [0], [1], [0, 0, 1, 1], [], []>} : vector<16x8xf32>, vector<8x256xf32>, vector<16x256xf32> -> vector<16x256xf32>
    %c3 = arith.constant 3 : index
    %c0_17 = arith.constant 0 : index
    %c0_18 = arith.constant 0 : index
    %27 = vector.load %arg4[%c3, %c0_17, %c0_18] : memref<6x16x256xf32, #tpu.memory_space<vmem>>, vector<1x16x256xf32>
    %28 = vector.shape_cast %27 : vector<1x16x256xf32> to vector<16x256xf32>
    %29 = vector.shape_cast %26 : vector<16x256xf32> to vector<1x16x256xf32>
    tpu.vector_store %arg4[%c3, %c0_17, %c0_18], %29 {strides = array<i32>} : memref<6x16x256xf32, #tpu.memory_space<vmem>>, vector<1x16x256xf32>,
    %30 = vector.extract_strided_slice %4 {offsets = [4, 0, 0], sizes = [1, 8, 256], strides = [1, 1, 1]} : vector<6x8x256xf32> to vector<1x8x256xf32>
    %31 = vector.shape_cast %30 : vector<1x8x256xf32> to vector<8x256xf32>
    %cst_19 = arith.constant dense<0.000000e+00> : vector<16x256xf32>
    %32 = tpu.matmul %5, %31, %cst_19 {dimension_numbers = #tpu.dot_dimension_numbers<[1], [0], [0], [1], [0, 0, 1, 1], [], []>} : vector<16x8xf32>, vector<8x256xf32>, vector<16x256xf32> -> vector<16x256xf32>
    %c4 = arith.constant 4 : index
    %c0_20 = arith.constant 0 : index
    %c0_21 = arith.constant 0 : index
    %33 = vector.load %arg4[%c4, %c0_20, %c0_21] : memref<6x16x256xf32, #tpu.memory_space<vmem>>, vector<1x16x256xf32>
    %34 = vector.shape_cast %33 : vector<1x16x256xf32> to vector<16x256xf32>
    %35 = vector.shape_cast %32 : vector<16x256xf32> to vector<1x16x256xf32>
    tpu.vector_store %arg4[%c4, %c0_20, %c0_21], %35 {strides = array<i32>} : memref<6x16x256xf32, #tpu.memory_space<vmem>>, vector<1x16x256xf32>,
    %36 = vector.extract_strided_slice %4 {offsets = [5, 0, 0], sizes = [1, 8, 256], strides = [1, 1, 1]} : vector<6x8x256xf32> to vector<1x8x256xf32>
    %37 = vector.shape_cast %36 : vector<1x8x256xf32> to vector<8x256xf32>
    %cst_22 = arith.constant dense<0.000000e+00> : vector<16x256xf32>
    %38 = tpu.matmul %5, %37, %cst_22 {dimension_numbers = #tpu.dot_dimension_numbers<[1], [0], [0], [1], [0, 0, 1, 1], [], []>} : vector<16x8xf32>, vector<8x256xf32>, vector<16x256xf32> -> vector<16x256xf32>
    %c5 = arith.constant 5 : index
    %c0_23 = arith.constant 0 : index
    %c0_24 = arith.constant 0 : index
    %39 = vector.load %arg4[%c5, %c0_23, %c0_24] : memref<6x16x256xf32, #tpu.memory_space<vmem>>, vector<1x16x256xf32>
    %40 = vector.shape_cast %39 : vector<1x16x256xf32> to vector<16x256xf32>
    %41 = vector.shape_cast %38 : vector<16x256xf32> to vector<1x16x256xf32>
    tpu.vector_store %arg4[%c5, %c0_23, %c0_24], %41 {strides = array<i32>} : memref<6x16x256xf32, #tpu.memory_space<vmem>>, vector<1x16x256xf32>,
    return
  }
  func.func @transform_0(%arg0: i32) -> (i32, i32, i32) {
    %c0_i32 = arith.constant 0 : i32
    %c0_i32_0 = arith.constant 0 : i32
    %c0_i32_1 = arith.constant 0 : i32
    return %arg0, %c0_i32, %c0_i32_0 : i32, i32, i32
  }
  func.func @transform_1(%arg0: i32) -> (i32, i32) {
    %c0_i32 = arith.constant 0 : i32
    %c0_i32_0 = arith.constant 0 : i32
    %c0_i32_1 = arith.constant 0 : i32
    return %c0_i32, %c0_i32_0 : i32, i32
  }
  func.func @transform_2(%arg0: i32) -> (i32, i32) {
    %c0_i32 = arith.constant 0 : i32
    %c0_i32_0 = arith.constant 0 : i32
    %c0_i32_1 = arith.constant 0 : i32
    return %c0_i32, %c0_i32_0 : i32, i32
  }
  func.func @transform_3(%arg0: i32) -> (i32, i32, i32) {
    %c0_i32 = arith.constant 0 : i32
    %c0_i32_0 = arith.constant 0 : i32
    %c0_i32_1 = arith.constant 0 : i32
    return %arg0, %c0_i32, %c0_i32_0 : i32, i32, i32
  }
}

</mosaic_0001>

<bundles_post_ra>
// kernel: tpu_custom_call.1
= control target key start
LH: loop header
LB: loop body
LE: loop exit
PB: predicated region body
PF: predicated region fallthrough
CT: control target
= control target key end

     0   :  { %8 = vsyncpa [#allocation3], 0  ;;  %s697_s0 = inlined_call_operand.hbm [shape: f32[6,8,64], index: 0, kind: input, shape index: {}]   ;;  %s698_s1 = inlined_call_operand.hbm [shape: f32[64,256], index: 1, kind: input, shape index: {}]   ;;  %s699_s2 = inlined_call_operand.vmem [shape: f32[16,8], index: 2, kind: input, shape index: {}]   ;;  %s700_s3 = inlined_call_operand.hbm [shape: f32[6,16,256], index: 3, kind: output, shape index: {}]  }
   0x1   :  { %9 = vsyncpa [#allocation6], 0 }
   0x2   :  { %10 = vsyncpa [#allocation4], 0  ;;  %s15_s14 = sshll.u32 %s697_s0, 4  ;;  %s613_s15 = smov [#allocation2]   ;;  %s16_s14 = int_to_ptr.hbm [resolvable:$true] %s15_s14 }
   0x3   :  { %s17_s16 = sshll.u32 %s613_s15, 4  ;;  %s28_s19 = sshll.u32 %s698_s1, 4  ;;  %s18_s16 = int_to_ptr.vmem [resolvable:$true] %s17_s16  ;;  %s29_s19 = int_to_ptr.hbm [resolvable:$true] %s28_s19 }
   0x4   :  { %s614_s20 = smov 128   ;;  %s615_s21 = smov 8  }
   0x5   :  { %23 = dma.hbm_to_vmem [thread:$0]  %s16_s14, 768, %s18_s16, [#allocation3], %s614_s20, %s614_s20, %s615_s21  }
   0x6   :  { %s616_s22 = smov [#allocation5]   ;;  %s617_s24 = smov 256  }
   0x7   :  { %s30_s23 = sshll.u32 %s616_s22, 4  ;;  %s618_s25 = smov 16   ;;  %s31_s23 = int_to_ptr.vmem [resolvable:$true] %s30_s23 }
   0x8   :  { %36 = dma.hbm_to_vmem [thread:$0]  %s29_s19, 2048, %s31_s23, [#allocation6], %s617_s24, %s617_s24, %s618_s25  }
   0x9   :  { %607 = dma.done.wait [#allocation3], 768  }
   0xa   :  { %608 = vsyncadd [#allocation3], 4294966528 }
   0xb   :  { %609 = dma.done.wait [#allocation6], 2048  }
   0xc   :  { %610 = vsyncadd [#allocation6], 4294965248  ;;  %v67_v0 = vld [vmem:[#allocation5 + $0x70] sm:$0xff]  ;;  %v68_v1 = vld [vmem:[#allocation5 + $0x78] sm:$0xff]  ;;  %vm69_vm0 = vcmask 523264   ;;  %vm160_vm1 = vcmask 64512  }
   0xd   :  { %v65_v2 = vld [vmem:[#allocation5 + $0x60] sm:$0xff]  ;;  %96 = vmatpush.msra.mxu0 %v67_v0  ;;  %131 = vmatpush.msra.mxu1 %v68_v1  ;;  %v66_v3 = vld [vmem:[#allocation5 + $0x68] sm:$0xff]  ;;  %v63_v4 = vld [vmem:[#allocation5 + $0x50] sm:$0xff]  ;;  %s478_s4 = sshll.u32 %s700_s3, 4  ;;  %s479_s4 = int_to_ptr.hbm [resolvable:$true] %s478_s4 }
   0xe   :  { %v64_v5 = vld [vmem:[#allocation5 + $0x58] sm:$0xff]  ;;  %v61_v6 = vld [vmem:[#allocation5 + $0x40] sm:$0xff]  ;;  %v62_v7 = vld [vmem:[#allocation5 + $0x48] sm:$0xff] }
   0xf   :  { %97 = vmatpush.msra.mxu0 %v65_v2  ;;  %132 = vmatpush.msra.mxu1 %v66_v3  ;;  %v59_v8 = vld [vmem:[#allocation5 + $0x30] sm:$0xff]  ;;  %v60_v9 = vld [vmem:[#allocation5 + $0x38] sm:$0xff]  ;;  %v57_v10 = vld [vmem:[#allocation5 + $0x20] sm:$0xff] }
  0x10   :  { %v58_v11 = vld [vmem:[#allocation5 + $0x28] sm:$0xff]  ;;  %v55_v12 = vld [vmem:[#allocation5 + $0x10] sm:$0xff]  ;;  %v56_v13 = vld [vmem:[#allocation5 + $0x18] sm:$0xff] }
  0x11   :  { %98 = vmatpush.msra.mxu0 %v63_v4  ;;  %133 = vmatpush.msra.mxu1 %v64_v5  ;;  %v53_v14 = vld [vmem:[#allocation5] sm:$0xff]  ;;  %v54_v15 = vld [vmem:[#allocation5 + $0x8] sm:$0xff]  ;;  %v47_v16 = vld [vmem:[#allocation2] sm:$0xff] }
  0x12   :  { %v48_v17 = vld [vmem:[#allocation2 + $0x8] sm:$0xff]  ;;  %v49_v18 = vld [vmem:[#allocation2 + $0x10] sm:$0xff]  ;;  %v50_v19 = vld [vmem:[#allocation2 + $0x18] sm:$0xff] }
  0x13   :  { %99 = vmatpush.msra.mxu0 %v61_v6  ;;  %134 = vmatpush.msra.mxu1 %v62_v7  ;;  %v51_v20 = vld [vmem:[#allocation2 + $0x20] sm:$0xff]  ;;  %v52_v21 = vld [vmem:[#allocation2 + $0x28] sm:$0xff] }
  0x14   :  { %v158_v22 = vld [vmem:[%s699_s2] sm:$0xff]  ;;  %v159_v25 = vld [vmem:[%s699_s2 + $0x8] sm:$0xff]  ;;  %s619_s2 = smov [#allocation7]  }
  0x15   :  { %100 = vmatpush.msra.mxu0 %v59_v8  ;;  %135 = vmatpush.msra.mxu1 %v60_v9  ;;  %s476_s28 = sshll.u32 %s619_s2, 4  ;;  %s477_s28 = int_to_ptr.vmem [resolvable:$true] %s476_s28 }
  0x17   :  { %101 = vmatpush.msra.mxu0 %v57_v10  ;;  %136 = vmatpush.msra.mxu1 %v58_v11 }
  0x19   :  { %102 = vmatpush.msra.mxu0 %v55_v12  ;;  %137 = vmatpush.msra.mxu1 %v56_v13 }
  0x1b   :  { %103 = vmatpush.msra.mxu0 %v53_v14  ;;  %138 = vmatpush.msra.mxu1 %v54_v15 }
  0x1c   :  { %492 = vmatmul.msk.f32.vlgmr.msra.gmra.mxu0 %vm69_vm0, %v47_v16  ;;  %498 = vmatmul.msk.f32.vlgmr.msra.gmra.mxu1 %vm69_vm0, %v47_v16 }
  0x24   :  { %493 = vmatmul.msk.f32.gmra.mxu0 %vm69_vm0, %v48_v17  ;;  %499 = vmatmul.msk.f32.gmra.mxu1 %vm69_vm0, %v48_v17 }
  0x2c   :  { %494 = vmatmul.msk.f32.gmra.mxu0 %vm69_vm0, %v49_v18  ;;  %500 = vmatmul.msk.f32.gmra.mxu1 %vm69_vm0, %v49_v18 }
  0x34   :  { %495 = vmatmul.msk.f32.gmra.mxu0 %vm69_vm0, %v50_v19  ;;  %501 = vmatmul.msk.f32.gmra.mxu1 %vm69_vm0, %v50_v19 }
  0x3c   :  { %496 = vmatmul.msk.f32.gmra.mxu0 %vm69_vm0, %v51_v20  ;;  %502 = vmatmul.msk.f32.gmra.mxu1 %vm69_vm0, %v51_v20 }
  0x44   :  { %497 = vmatmul.msk.f32.gmra.mxu0 %vm69_vm0, %v52_v21  ;;  %503 = vmatmul.msk.f32.gmra.mxu1 %vm69_vm0, %v52_v21 }
  0x99   :  { %v105_v23 = vpop.f32.mrf.mxu0  ;;  %v140_v24 = vpop.f32.mrf.mxu1 }
  0x9a   :  { %182 = vmatpush.msra.mxu2 %v105_v23  ;;  %205 = vmatpush.msra.mxu3 %v140_v24 }
  0x9b   :  { %504 = vmatmul.msk.f32.vlgmr.msra.gmra.mxu2 %vm160_vm1, %v158_v22  ;;  %506 = vmatmul.msk.f32.vlgmr.msra.gmra.mxu3 %vm160_vm1, %v158_v22 }
  0xa1   :  { %v108_v26 = vpop.f32.mrf.mxu0  ;;  %v143_v27 = vpop.f32.mrf.mxu1 }
  0xa2   :  { %232 = vmatpush.msrb.mxu2 %v108_v26  ;;  %255 = vmatpush.msrb.mxu3 %v143_v27 }
  0xa3   :  { %505 = vmatmul.msk.f32.gmra.mxu2 %vm160_vm1, %v159_v25  ;;  %507 = vmatmul.msk.f32.gmra.mxu3 %vm160_vm1, %v159_v25 }
  0xa9   :  { %v111_v28 = vpop.f32.mrf.mxu0  ;;  %v146_v29 = vpop.f32.mrf.mxu1 }
  0xaa   :  { %283 = vmatpush.msra.mxu2 %v111_v28  ;;  %306 = vmatpush.msra.mxu3 %v146_v29 }
  0xab   :  { %508 = vmatmul.msk.f32.vlgmr.msrb.gmra.mxu2 %vm160_vm1, %v158_v22  ;;  %510 = vmatmul.msk.f32.vlgmr.msrb.gmra.mxu3 %vm160_vm1, %v158_v22 }
  0xb1   :  { %v114_v30 = vpop.f32.mrf.mxu0  ;;  %v149_v31 = vpop.f32.mrf.mxu1 }
  0xb2   :  { %334 = vmatpush.msrb.mxu2 %v114_v30  ;;  %357 = vmatpush.msrb.mxu3 %v149_v31 }
  0xb3   :  { %509 = vmatmul.msk.f32.gmra.mxu2 %vm160_vm1, %v159_v25  ;;  %511 = vmatmul.msk.f32.gmra.mxu3 %vm160_vm1, %v159_v25 }
  0xb9   :  { %v117_v32 = vpop.f32.mrf.mxu0  ;;  %v152_v33 = vpop.f32.mrf.mxu1 }
  0xba   :  { %385 = vmatpush.msrb.mxu0 %v117_v32  ;;  %408 = vmatpush.msrb.mxu1 %v152_v33 }
  0xbb   :  { %512 = vmatmul.msk.f32.vlgmr.msra.gmra.mxu2 %vm160_vm1, %v158_v22  ;;  %514 = vmatmul.msk.f32.vlgmr.msra.gmra.mxu3 %vm160_vm1, %v158_v22 }
  0xbc   :  { %520 = vmatmul.msk.f32.vlgmr.msrb.gmra.mxu0 %vm160_vm1, %v158_v22  ;;  %522 = vmatmul.msk.f32.vlgmr.msrb.gmra.mxu1 %vm160_vm1, %v158_v22 }
  0xc1   :  { %v120_v34 = vpop.f32.mrf.mxu0  ;;  %v155_v35 = vpop.f32.mrf.mxu1 }
  0xc2   :  { %436 = vmatpush.msra.mxu2 %v120_v34  ;;  %459 = vmatpush.msra.mxu3 %v155_v35 }
  0xc3   :  { %513 = vmatmul.msk.f32.gmra.mxu2 %vm160_vm1, %v159_v25  ;;  %515 = vmatmul.msk.f32.gmra.mxu3 %vm160_vm1, %v159_v25 }
  0xc4   :  { %521 = vmatmul.msk.f32.gmra.mxu0 %vm160_vm1, %v159_v25  ;;  %523 = vmatmul.msk.f32.gmra.mxu1 %vm160_vm1, %v159_v25 }
  0xcb   :  { %516 = vmatmul.msk.f32.vlgmr.msrb.gmra.mxu2 %vm160_vm1, %v158_v22  ;;  %518 = vmatmul.msk.f32.vlgmr.msrb.gmra.mxu3 %vm160_vm1, %v158_v22 }
  0xd3   :  { %517 = vmatmul.msk.f32.gmra.mxu2 %vm160_vm1, %v159_v25  ;;  %519 = vmatmul.msk.f32.gmra.mxu3 %vm160_vm1, %v159_v25 }
  0xdb   :  { %524 = vmatmul.msk.f32.vlgmr.msra.gmra.mxu2 %vm160_vm1, %v158_v22  ;;  %526 = vmatmul.msk.f32.vlgmr.msra.gmra.mxu3 %vm160_vm1, %v158_v22 }
  0xe3   :  { %525 = vmatmul.msk.f32.gmra.mxu2 %vm160_vm1, %v159_v25  ;;  %527 = vmatmul.msk.f32.gmra.mxu3 %vm160_vm1, %v159_v25 }
 0x11e   :  { %v184_v36 = vpop.f32.mrf.mxu2  ;;  %v207_v37 = vpop.f32.mrf.mxu3 }
 0x11f   :  { %213 = vst [vmem:[#allocation7] sm:$0xff] %v184_v36 }
 0x120   :  { %214 = vst [vmem:[#allocation7 + $0x8] sm:$0xff] %v207_v37 }
 0x126   :  { %v187_v38 = vpop.f32.mrf.mxu2  ;;  %v210_v39 = vpop.f32.mrf.mxu3 }
 0x127   :  { %215 = vst [vmem:[#allocation7 + $0x10] sm:$0xff] %v187_v38 }
 0x128   :  { %216 = vst [vmem:[#allocation7 + $0x18] sm:$0xff] %v210_v39 }
 0x12e   :  { %v234_v40 = vpop.f32.mrf.mxu2  ;;  %v257_v41 = vpop.f32.mrf.mxu3 }
 0x12f   :  { %264 = vst [vmem:[#allocation7 + $0x20] sm:$0xff] %v234_v40 }
 0x130   :  { %265 = vst [vmem:[#allocation7 + $0x28] sm:$0xff] %v257_v41 }
 0x136   :  { %v237_v42 = vpop.f32.mrf.mxu2  ;;  %v260_v43 = vpop.f32.mrf.mxu3 }
 0x137   :  { %266 = vst [vmem:[#allocation7 + $0x30] sm:$0xff] %v237_v42 }
 0x138   :  { %267 = vst [vmem:[#allocation7 + $0x38] sm:$0xff] %v260_v43 }
 0x139   :  { %v387_v44 = vpop.f32.mrf.mxu0  ;;  %v410_v45 = vpop.f32.mrf.mxu1 }
 0x13a   :  { %417 = vst [vmem:[#allocation7 + $0x80] sm:$0xff] %v387_v44 }
 0x13b   :  { %418 = vst [vmem:[#allocation7 + $0x88] sm:$0xff] %v410_v45 }
 0x13e   :  { %v285_v46 = vpop.f32.mrf.mxu2  ;;  %v308_v47 = vpop.f32.mrf.mxu3 }
 0x13f   :  { %315 = vst [vmem:[#allocation7 + $0x40] sm:$0xff] %v285_v46 }
 0x140   :  { %316 = vst [vmem:[#allocation7 + $0x48] sm:$0xff] %v308_v47 }
 0x141   :  { %v390_v48 = vpop.f32.mrf.mxu0  ;;  %v413_v49 = vpop.f32.mrf.mxu1 }
 0x142   :  { %419 = vst [vmem:[#allocation7 + $0x90] sm:$0xff] %v390_v48 }
 0x143   :  { %420 = vst [vmem:[#allocation7 + $0x98] sm:$0xff] %v413_v49 }
 0x146   :  { %v288_v50 = vpop.f32.mrf.mxu2  ;;  %v311_v51 = vpop.f32.mrf.mxu3 }
 0x147   :  { %317 = vst [vmem:[#allocation7 + $0x50] sm:$0xff] %v288_v50 }
 0x148   :  { %318 = vst [vmem:[#allocation7 + $0x58] sm:$0xff] %v311_v51 }
 0x14e   :  { %v336_v52 = vpop.f32.mrf.mxu2  ;;  %v359_v53 = vpop.f32.mrf.mxu3 }
 0x14f   :  { %366 = vst [vmem:[#allocation7 + $0x60] sm:$0xff] %v336_v52 }
 0x150   :  { %367 = vst [vmem:[#allocation7 + $0x68] sm:$0xff] %v359_v53 }
 0x156   :  { %v339_v54 = vpop.f32.mrf.mxu2  ;;  %v362_v55 = vpop.f32.mrf.mxu3 }
 0x157   :  { %368 = vst [vmem:[#allocation7 + $0x70] sm:$0xff] %v339_v54 }
 0x158   :  { %369 = vst [vmem:[#allocation7 + $0x78] sm:$0xff] %v362_v55 }
 0x15e   :  { %v438_v56 = vpop.f32.mrf.mxu2  ;;  %v461_v57 = vpop.f32.mrf.mxu3 }
 0x15f   :  { %468 = vst [vmem:[#allocation7 + $0xa0] sm:$0xff] %v438_v56 }
 0x160   :  { %469 = vst [vmem:[#allocation7 + $0xa8] sm:$0xff] %v461_v57 }
 0x166   :  { %v441_v58 = vpop.f32.mrf.mxu2  ;;  %v464_v59 = vpop.f32.mrf.mxu3 }
 0x167   :  { %470 = vst [vmem:[#allocation7 + $0xb0] sm:$0xff] %v441_v58 }
 0x168   :  { %471 = vst [vmem:[#allocation7 + $0xb8] sm:$0xff] %v464_v59 }
 0x169   :  { %484 = dma.vmem_to_hbm [thread:$0]  %s477_s28, 3072, %s479_s4, [#allocation4], %s617_s24, %s617_s24, %s618_s25  }
 0x16a   :  { %611 = dma.done.wait [#allocation4], 3072  }
 0x16b   :  { %612 = vsyncadd [#allocation4], 4294964224 }
 0x16c   :  { %489 = vsyncpa [#allocation3], 1 }
 0x16d   :  { %490 = vsyncpa [#allocation6], 1 }
 0x16e   :  { %491 = vsyncpa [#allocation4], 1 }

</bundles_post_ra>
